<compile_context>
chip_gen: v6e
topology: v6e:2x2x1
jax: 0.10.0
libtpu: 0.0.40
codegen_flags: <defaults>
</compile_context>

<pallas_src>
import jax
import jax.numpy as jnp
from jax import lax
from jax.experimental import pallas as pl
from jax.experimental.pallas import tpu as pltpu


def _retrieval_kernel(x_ref, w_ref, b_ref, o_ref):
    # x_ref: (Bt, C, HW) bf16/f32   (NCHW layout, spatial flattened)
    # w_ref: (C, D)      bf16/f32   (already scaled by 1/(H*W))
    # b_ref: (1, D)      f32
    # o_ref: (Bt, D)

    # Spatial pooling: reduce over the lane axis (XLU) with f32 accumulation.
    # The XLU has slack in a DMA-bound kernel, so this is effectively free.
    pooled = jnp.sum(x_ref[...].astype(jnp.float32), axis=-1)            # (Bt, C)

    # Embedding head: native bf16 x bf16 -> f32 on the MXU.  The 1/(H*W) mean
    # scale was folded into w on the host, bias is added afterwards.
    emb = jnp.dot(pooled.astype(w_ref.dtype), w_ref[...],
                  preferred_element_type=jnp.float32)                    # (Bt, D)
    emb = emb + b_ref[...]

    # F.normalize(emb, p=2, dim=1) == emb * rsqrt(max(||emb||^2, eps^2)),
    # eps = 1e-12  ->  eps^2 = 1e-24 (still an f32 normal number).
    sumsq = jnp.sum(emb * emb, axis=-1, keepdims=True)
    inv_norm = lax.rsqrt(jnp.maximum(sumsq, 1e-24))                      # EUP
    o_ref[...] = (emb * inv_norm).astype(o_ref.dtype)


def _pick_batch_tile(B, C, HW, x_itemsize, vmem_budget_bytes):
    # Footprint per batch row inside the kernel: double-buffered x tile plus a
    # (conservative) f32 temp in case the cast does not fuse into the reduce.
    per_row = 2 * C * HW * x_itemsize + C * HW * 4
    bt = max(int(vmem_budget_bytes // max(per_row, 1)), 8)
    bt = min(bt, 1024)                       # v6e/v5e: big tiles amortize per-step cost
    bt = min(bt, max(8, -(-B // 2)))         # >= 2 grid steps (v7x megacore)
    bt = max(8, (bt // 8) * 8)               # sublane-dense (Bt, D) output stores
    # Prefer a tile that divides B so no padding copy of x is needed.
    cand = bt
    while cand > 8 and B % cand != 0:
        cand -= 8
    if cand >= 8 and B % cand == 0:
        bt = cand
    return bt


def retrieval_net_forward(x_nchw, w, b, *, batch_tile=None,
                          vmem_budget_bytes=24 << 20,   # x-stream budget (v7x-safe)
                          vmem_limit_bytes=None,
                          out_dtype=jnp.float32):
    """x_nchw: (B, C, H, W); w: (C, D); b: (D,). Returns L2-normalized (B, D)."""
    B, C, H, W = x_nchw.shape
    HW = H * W
    Cw, D = w.shape
    assert Cw == C, "weight/channel mismatch"

    # NCHW stays NCHW: a contiguous reshape only, no transpose / extra HBM pass.
    x_flat = x_nchw.reshape(B, C, HW)

    # Fold the global-average-pool 1/(H*W) scale into the weight (one-time,
    # outside the kernel); removes a per-step (Bt, D) VPU multiply.
    inv_hw = 1.0 / float(HW)
    w_scaled = (w.astype(jnp.float32) * inv_hw).astype(w.dtype)
    b2 = b.astype(jnp.float32).reshape(1, D)

    x_itemsize = jnp.dtype(x_flat.dtype).itemsize
    if batch_tile is None:
        Bt = _pick_batch_tile(B, C, HW, x_itemsize, vmem_budget_bytes)
    else:
        Bt = max(8, (int(batch_tile) // 8) * 8) if batch_tile < B else B

    Bp = pl.cdiv(B, Bt) * Bt
    if Bp != B:
        # Fallback only (avoided by the divisor-preferring heuristic above).
        x_flat = jnp.pad(x_flat, ((0, Bp - B), (0, 0), (0, 0)))

    # Scoped-VMEM limit derived from the same footprint model as the tiling
    # (2x double-buffered x + possible f32 cast temp + resident w/b + temps).
    if vmem_limit_bytes is None:
        est = (2 * Bt * C * HW * x_itemsize            # double-buffered x tile
               + Bt * C * HW * 4                        # conservative f32 cast temp
               + 2 * (C * D * jnp.dtype(w_scaled.dtype).itemsize + D * 4)
               + 2 * Bt * D * jnp.dtype(out_dtype).itemsize
               + Bt * (C + 2 * D) * 4)                  # pooled / emb f32 temps
        vmem_limit_bytes = max(16 << 20, int(1.5 * est) + (2 << 20))

    out = pl.pallas_call(
        _retrieval_kernel,
        out_shape=jax.ShapeDtypeStruct((Bp, D), out_dtype),
        grid_spec=pltpu.PrefetchScalarGridSpec(
            num_scalar_prefetch=0,
            grid=(Bp // Bt,),
            in_specs=[
                # x: streamed + double-buffered per batch tile, NCHW layout.
                pl.BlockSpec((Bt, C, HW), lambda i: (i, 0, 0)),
                # w, b: constant block index -> resident in VMEM, no re-DMA.
                pl.BlockSpec((C, D), lambda i: (0, 0)),
                pl.BlockSpec((1, D), lambda i: (0, 0)),
            ],
            out_specs=pl.BlockSpec((Bt, D), lambda i: (i, 0)),
        ),
        compiler_params=pltpu.CompilerParams(
            # Batch tiles are independent -> megacore sharding on v7x.
            dimension_semantics=("parallel",),
            vmem_limit_bytes=int(vmem_limit_bytes)),
    )(x_flat, w_scaled, b2)

    return out[:B] if Bp != B else out


if __name__ == "__main__":
    # Small, deterministic example (16 images, 4 channels, 16x16, 32-dim emb).
    # TODO(synk): the real trunk is an arbitrary backbone; here it is a
    # synthetic GAP + Linear head fused with the L2-normalize.
    B, C, H, W, D = 16, 4, 16, 16, 32
    key = jax.random.PRNGKey(0)
    kx, kw, kb = jax.random.split(key, 3)

    x = jax.random.normal(kx, (B, C, H, W), dtype=jnp.float32)
    bound = 1.0 / float(jnp.sqrt(jnp.float32(C)))  # PyTorch-Linear-like scale
    w = jax.random.uniform(kw, (C, D), minval=-bound, maxval=bound,
                           dtype=jnp.float32)
    b = jax.random.uniform(kb, (D,), minval=-bound, maxval=bound,
                           dtype=jnp.float32)

    # bf16 on the HBM-bound activation/weight path; kernel accumulates in f32.
    x_bf = x.astype(jnp.bfloat16)
    w_bf = w.astype(jnp.bfloat16)

    # batch_tile heuristic picks Bt=8 here -> 2 pipelined grid steps.
    out = retrieval_net_forward(x_bf, w_bf, b)
    out = jax.block_until_ready(out)

    # Pure-JAX f32 reference from the same bf16 inputs.  The kernel runs the
    # pooled@w matmul natively in bf16 on the MXU, so tolerances are relaxed
    # to bf16 level (~1e-2) relative to this fully-f32 reference.
    xf = x_bf.astype(jnp.float32)
    wf = w_bf.astype(jnp.float32)
    pooled_ref = jnp.mean(xf.reshape(B, C, H * W), axis=-1)
    emb_ref = pooled_ref @ wf + b
    norm_ref = jnp.maximum(
        jnp.sqrt(jnp.sum(emb_ref * emb_ref, axis=1, keepdims=True)), 1e-12)
    ref = emb_ref / norm_ref

    assert out.shape == (B, D)
    assert jnp.allclose(out, ref, atol=1e-2, rtol=1e-2), "mismatch vs reference"
    print("KERNEL_OK")
</pallas_src>

<mosaic_0001>
module attributes {stable_mosaic.version = 11 : i64} {
  func.func @_retrieval_kernel(%arg0: i32, %arg1: memref<8x4x256xbf16, #tpu.memory_space<vmem>>, %arg2: memref<4x32xbf16, #tpu.memory_space<vmem>>, %arg3: memref<1x32xf32, #tpu.memory_space<vmem>>, %arg4: memref<8x32xf32, #tpu.memory_space<vmem>>) attributes {dimension_semantics = [#tpu.dimension_semantics<parallel>], iteration_bounds = array<i64: 2>, scalar_prefetch = 0 : i64, scratch_operands = 0 : i64, tpu.core_type = #tpu.core_type<tc>, window_params = [{transform_indices = @transform_0, window_bounds = array<i64: 8, 4, 256>}, {pipeline_mode = #tpu.pipeline_mode<synchronous>, transform_indices = @transform_1, window_bounds = array<i64: 4, 32>}, {pipeline_mode = #tpu.pipeline_mode<synchronous>, transform_indices = @transform_2, window_bounds = array<i64: 1, 32>}, {transform_indices = @transform_3, window_bounds = array<i64: 8, 32>}]} {
    %c0 = arith.constant 0 : index
    %c0_0 = arith.constant 0 : index
    %c0_1 = arith.constant 0 : index
    %0 = vector.load %arg1[%c0, %c0_0, %c0_1] : memref<8x4x256xbf16, #tpu.memory_space<vmem>>, vector<8x4x256xbf16>
    %1 = arith.extf %0 : vector<8x4x256xbf16> to vector<8x4x256xf32>
    %cst = arith.constant dense<0.000000e+00> : vector<8x4xf32>
    %2 = vector.multi_reduction <add>, %1, %cst [2] : vector<8x4x256xf32> to vector<8x4xf32>
    %3 = arith.truncf %2 : vector<8x4xf32> to vector<8x4xbf16>
    %c0_2 = arith.constant 0 : index
    %c0_3 = arith.constant 0 : index
    %4 = vector.load %arg2[%c0_2, %c0_3] : memref<4x32xbf16, #tpu.memory_space<vmem>>, vector<4x32xbf16>
    %cst_4 = arith.constant dense<0.000000e+00> : vector<8x32xf32>
    %5 = tpu.matmul %3, %4, %cst_4 {dimension_numbers = #tpu.dot_dimension_numbers<[1], [0], [0], [1], [0, 0, 1, 1], [], []>} : vector<8x4xbf16>, vector<4x32xbf16>, vector<8x32xf32> -> vector<8x32xf32>
    %c0_5 = arith.constant 0 : index
    %c0_6 = arith.constant 0 : index
    %6 = vector.load %arg3[%c0_5, %c0_6] : memref<1x32xf32, #tpu.memory_space<vmem>>, vector<1x32xf32>
    %7 = vector.broadcast %6 : vector<1x32xf32> to vector<8x32xf32>
    %8 = arith.addf %5, %7 : vector<8x32xf32>
    %9 = arith.mulf %8, %8 : vector<8x32xf32>
    %cst_7 = arith.constant dense<0.000000e+00> : vector<8xf32>
    %10 = vector.multi_reduction <add>, %9, %cst_7 [1] : vector<8x32xf32> to vector<8xf32>
    %11 = vector.shape_cast %10 : vector<8xf32> to vector<8x1xf32>
    %cst_8 = arith.constant 1.000000e-24 : f32
    %12 = vector.broadcast %cst_8 : f32 to vector<8x1xf32>
    %13 = arith.maximumf %11, %12 : vector<8x1xf32>
    %14 = math.rsqrt %13 : vector<8x1xf32>
    %15 = vector.broadcast %14 : vector<8x1xf32> to vector<8x32xf32>
    %16 = arith.mulf %8, %15 : vector<8x32xf32>
    %c0_9 = arith.constant 0 : index
    %c0_10 = arith.constant 0 : index
    %17 = vector.load %arg4[%c0_9, %c0_10] : memref<8x32xf32, #tpu.memory_space<vmem>>, vector<8x32xf32>
    tpu.vector_store %arg4[%c0_9, %c0_10], %16 {strides = array<i32>} : memref<8x32xf32, #tpu.memory_space<vmem>>, vector<8x32xf32>,
    return
  }
  func.func @transform_0(%arg0: i32) -> (i32, i32, i32) {
    %c0_i32 = arith.constant 0 : i32
    %c0_i32_0 = arith.constant 0 : i32
    %c0_i32_1 = arith.constant 0 : i32
    return %arg0, %c0_i32, %c0_i32_0 : i32, i32, i32
  }
  func.func @transform_1(%arg0: i32) -> (i32, i32) {
    %c0_i32 = arith.constant 0 : i32
    %c0_i32_0 = arith.constant 0 : i32
    %c0_i32_1 = arith.constant 0 : i32
    return %c0_i32, %c0_i32_0 : i32, i32
  }
  func.func @transform_2(%arg0: i32) -> (i32, i32) {
    %c0_i32 = arith.constant 0 : i32
    %c0_i32_0 = arith.constant 0 : i32
    %c0_i32_1 = arith.constant 0 : i32
    return %c0_i32, %c0_i32_0 : i32, i32
  }
  func.func @transform_3(%arg0: i32) -> (i32, i32) {
    %c0_i32 = arith.constant 0 : i32
    %c0_i32_0 = arith.constant 0 : i32
    return %arg0, %c0_i32 : i32, i32
  }
}

</mosaic_0001>

<bundles_post_ra>
// kernel: tpu_custom_call.1
= control target key start
LH: loop header
LB: loop body
LE: loop exit
PB: predicated region body
PF: predicated region fallthrough
CT: control target
= control target key end

     0   :  { %8 = vsyncpa [#allocation3], 0  ;;  %s968_s0 = inlined_call_operand.hbm [shape: bf16[16,4,256], index: 0, kind: input, shape index: {}]   ;;  %s969_s1 = inlined_call_operand.hbm [shape: bf16[4,32], index: 1, kind: input, shape index: {}]   ;;  %s970_s2 = inlined_call_operand.vmem [shape: f32[1,32], index: 2, kind: input, shape index: {}]   ;;  %s971_s3 = inlined_call_operand.hbm [shape: f32[16,32], index: 3, kind: output, shape index: {}]  }
   0x1   :  { %10 = vsyncpa [#allocation3 + $0x1], 0 }
   0x2   :  { %11 = vsyncpa [#allocation6], 0 }
   0x3   :  { %12 = vsyncpa [#allocation4], 0 }
   0x4   :  { %14 = vsyncpa [#allocation4 + $0x1], 0  ;;  %s779_s12 = smov 0   ;;  %s781_s13 = smov 0  }
   0x5   :  { %s783_s14 = smov 0   ;;  %s785_s15 = smov 0  }
   0x6 LB: > { %s800_s16 = sadd.s32 4294967295, %s750_s15   ;;  %s518_s17 = sadd.s32 4294967294, %s750_s15   ;;  %s750_s15 = sphi %s785_s15, %s994_s15   ;;  %s746_s14 = sphi %s783_s14, %s993_s14   ;;  %s742_s13 = sphi %s781_s13, %s992_s13   ;;  %s738_s12 = sphi %s779_s12, %s991_s12  }
   0x7   : > { %s804_s18 = sadd.s32 1, %s750_s15   ;;  %s27_s19 = sadd.s32 1, %s746_s14 }
   0x8   : > { %s24_s20 = ssub.s32 %s750_s15, %s804_s18  ;;  %p34_p0 = scmp.ne.s32.totalorder %s746_s14, %s742_s13 }
   0x9   : > { %p25_p1 = scmp.eq.s32.totalorder %s24_s20, 0  ;;  %p35_p2 = scmp.eq.s32.totalorder %s750_s15, 0 }
   0xa   : > { %p40_p3 = scmp.ne.s32.totalorder %s742_s13, %s738_s12  ;;  %p972_p4 = scmp.eq.s32.totalorder %s800_s16, 0 }
   0xb   : > { %s816_s21 = scalar_select %p25_p1, %s746_s14, %s27_s19  }
   0xc   : > { %p818_p5 = por %p35_p2, %p34_p0  ;;  %p824_p6 = por %p972_p4, %p40_p3 }
   0xd   : > { %p106_p7 = scmp.eq.s32.totalorder %s800_s16, 1  ;;  %p112_p8 = scmp.eq.s32.totalorder %s518_s17, 1 }
   0xe   : > { %s977_s23 = scalar_select %p824_p6, 1, 0 }
   0xf   : > { %p519_p9 = scmp.ge.s32.totalorder %s750_s15, 1  ;;  %p119_p10 = scmp.lt.s32.totalorder %s750_s15, 3 }
  0x10   : > { %p831_p11 = por %p106_p7, %p34_p0  ;;  %p835_p12 = por %p112_p8, %p40_p3 }
  0x11   : > { %p839_p13 = pnand %p519_p9, %p119_p10  ;;  %s752_s27 = smov [#allocation5]  }
  0x12   : > { %s978_s24 = scalar_select %p831_p11, 1, 0 }
  0x13   : > { %s979_s25 = scalar_select %p835_p12, 1, 0 }
  0x14   : > { %s980_s26 = scalar_select %p839_p13, 1, 0 }
  0x15   : > { %p573_p2 = pneg %p839_p13  ;;  %s132_s28 = sshll.u32 %s752_s27, 4  ;;  %s133_s28 = int_to_ptr.vmem [resolvable:$true] %s132_s28 }
  0x16   : > { %p586_p4 = scmp.lt.s32.totalorder %s750_s15, 2  ;;  %p981_p0 = scmp.eq.s32.totalorder %s800_s16, 0 }
  0x17   : > { %s146_s30 = sand.u32 1, %s746_s14   ;;  %s639_s6 = scalar_lea.vmem %s133_s28, 32 }
  0x18   : > { %p849_p7 = pnand %p573_p2, %p981_p0  ;;  %p856_p3 = pnand %p586_p4, %p818_p5 }
  0x19   : > { %s522_s5 = sshll.u32 %s146_s30, 5  ;;  %p640_p9 = scmp.ne.s32.totalorder %s133_s28, %s639_s6 }
  0x1a   : > { %p630_p8 = pneg %p849_p7  ;;  %p647_p12 = scmp.lt.s32.totalorder %s133_s28, %s133_s28 }
  0x1b   : > { %p648_p11 = scmp.lt.s32.totalorder %s639_s6, %s639_s6 }
  0x1c   : > { %p642_p10 = pnand %p640_p9, %p630_p8 }
  0x1d   : > { %p649_p2 = por %p648_p11, %p647_p12 }
  0x1e   : > { %p643_p1 = pneg %p642_p10 }
  0x20   : > { %p650_p0 = pnand %p649_p2, %p643_p1 }
  0x22   : > { %653 = shalt.err (!%p650_p0)
}
  0x23   : > { %576 = dma.hbm_to_vmem [thread:$0]  (!%p849_p7), %s969_s1, 32, %s133_s28, [#allocation6]  }
  0x24   : > { %s537_s9 = sshll.u32 %s750_s15, 9  ;;  %s150_s10 = scalar_lea.vmem [#allocation2], %s522_s5 }
  0x25   : > { %s158_s11 = sshll.u32 %s150_s10, 4  ;;  %s871_s20 = scalar_lea.hbm %s968_s0, %s537_s9  ;;  %s873_s11 = int_to_ptr.vmem [resolvable:$true] %s158_s11 }
  0x26   : > { %s875_s22 = scalar_lea.sflag [#allocation3], %s146_s30  ;;  %s654_s27 = scalar_lea.hbm %s871_s20, 512 }
  0x27   : > { %p655_p4 = scmp.ne.s32.totalorder %s871_s20, %s654_s27  ;;  %p656_p5 = pneg %p856_p3 }
  0x28   : > { %s659_s5 = scalar_lea.hbm %s968_s0, 1024  ;;  %p660_p1 = scmp.lt.s32.totalorder %s871_s20, %s968_s0 }
  0x29   : > { %p657_p11 = pnand %p656_p5, %p655_p4  ;;  %p661_p7 = scmp.lt.s32.totalorder %s659_s5, %s654_s27 }
  0x2b   : > { %p658_p12 = pneg %p657_p11  ;;  %p662_p8 = por %p661_p7, %p660_p1 }
  0x2d   : > { %p663_p9 = pnand %p662_p8, %p658_p12 }
  0x2f   : > { %666 = shalt.err (!%p663_p9)
}
  0x30   : > { %s667_s30 = scalar_lea.vmem %s873_s11, 512  ;;  %s753_s8 = smov [#allocation2]  }
  0x31   : > { %p668_p10 = scmp.ne.s32.totalorder %s873_s11, %s667_s30  ;;  %s672_s9 = sshll.u32 %s753_s8, 4  ;;  %s673_s9 = int_to_ptr.vmem [resolvable:$false] %s672_s9 }
  0x32   : > { %s674_s10 = scalar_lea.vmem %s673_s9, 1024  ;;  %p675_p4 = scmp.lt.s32.totalorder %s873_s11, %s673_s9 }
  0x33   : > { %p670_p2 = pnand %p668_p10, %p656_p5  ;;  %p676_p11 = scmp.lt.s32.totalorder %s674_s10, %s667_s30 }
  0x35   : > { %p671_p0 = pneg %p670_p2  ;;  %p677_p6 = por %p676_p11, %p675_p4 }
  0x37   : > { %p678_p13 = pnand %p677_p6, %p671_p0 }
  0x39   : > { %681 = shalt.err (!%p678_p13)
}
  0x3a   : > { %s754_s17 = smov 64   ;;  %s755_s19 = smov 4  }
  0x3b   : > { %580 = dma.hbm_to_vmem [thread:$0]  (!%p856_p3), %s871_s20, 512, %s873_s11, %s875_s22, %s754_s17, %s754_s17, %s755_s19  }
  0x3c   : > { %p984_p5 = scmp.ne.s32.totalorder %s980_s26, 0 }
  0x3d   : > { %s899_s27 = sand.u32 (!%p984_p5), 1, %s742_s13   ;;  %p985_p6 = scmp.ne.s32.totalorder (!%p984_p5), %s977_s23, 0 }
  0x3e   : > { %170 = sbr.rel (%p984_p5) target bundleno = 606 (0x25e), region = 32  ;;  %s527_s28 = sshll.u32 (!%p984_p5), %s899_s27, 5 }
  0x3f   : > { %s173_s29 = scalar_lea.sflag (!%p984_p5), [#allocation3], %s899_s27  ;;  %s176_s5 = scalar_lea.vmem (!%p984_p5), [#allocation2], %s527_s28 }
  0x43   : > { %725 = dma.done.wait (%p985_p6), %s173_s29, 512  }
  0x44   : > { %727 = vsyncadd (%p985_p6), %s173_s29, 4294966784  ;;  %p986_p13 = scmp.eq.s32.totalorder %s800_s16, 0 }
  0x46   : > { %729 = dma.done.wait (%p986_p13), [#allocation6], 32   ;;  %p987_p3 = pmov %p986_p13 }
  0x47   : > { %v539_v0 = vld [vmem:[%s176_s5] sm:$0xff]   ;;  %vm245_vm0 = vcmask 1043456   ;;  %v554_v1 = vld [vmem:[%s176_s5 + $0x8] sm:$0xff]   ;;  %v555_v2 = vld [vmem:[%s176_s5 + $0x10] sm:$0xff]   ;;  %vm371_vm1 = vcmask 1041408   ;;  %v756_v45 = vmov 0.0   ;;  %v318_v47 = vlaneseq }
  0x48   : > { %731 = vsyncadd (%p987_p3), [#allocation6], 4294967264  ;;  %v540_v3 = vunpack.c.l.bf16 %v539_v0  ;;  %v544_v4 = vunpack.c.l.bf16 %v554_v1  ;;  %v541_v5 = vunpack.c.h.bf16 %v539_v0  ;;  %v545_v6 = vunpack.c.h.bf16 %v554_v1  ;;  %v556_v7 = vld [vmem:[%s176_s5 + $0x18] sm:$0xff]   ;;  %v294_v44 = vld [vmem:[#allocation5] sm:$0x3]  ;;  %559 = vmatprep.subr.bf16.mxu0 %v756_v45  ;;  %s529_s4 = sshll.u32 %s899_s27, 3 }
  0x49   : > { %v548_v8 = vunpack.c.l.bf16 %v555_v2  ;;  %v549_v9 = vunpack.c.h.bf16 %v555_v2  ;;  %v552_v10 = vunpack.c.l.bf16 %v556_v7  ;;  %v553_v18 = vunpack.c.h.bf16 %v556_v7  ;;  %s533_s11 = sshll.u32 %s800_s16, 7  ;;  %s202_s20 = scalar_lea.vmem [#allocation7], %s529_s4 }
  0x4a   : > { %v229_v11 = vcombine.high %v540_v3, %v540_v3  ;;  %v246_v12 = vsel %vm245_vm0, %v540_v3, 0.0  ;;  %v231_v13 = vcombine.high %v544_v4, %v544_v4  ;;  %v256_v14 = vsel %vm245_vm0, %v544_v4, 0.0  ;;  %s438_s22 = sshll.u32 %s202_s20, 4  ;;  %s436_s30 = scalar_lea.hbm %s971_s3, %s533_s11  ;;  %s439_s22 = int_to_ptr.vmem [resolvable:$true] %s438_s22 }
  0x4b   : > { %v230_v15 = vcombine.high %v541_v5, %v541_v5  ;;  %v251_v16 = vsel %vm245_vm0, %v541_v5, 0.0  ;;  %v232_v17 = vcombine.high %v545_v6, %v545_v6  ;;  %v261_v21 = vsel %vm245_vm0, %v545_v6, 0.0  ;;  %s425_s8 = scalar_lea.sflag [#allocation4], %s899_s27  ;;  %s682_s9 = scalar_lea.vmem %s439_s22, 128 }
  0x4c   : > { %v247_v19 = vsel %vm245_vm0, %v229_v11, 0.0  ;;  %v257_v20 = vsel %vm245_vm0, %v231_v13, 0.0  ;;  %v233_v22 = vcombine.high %v548_v8, %v548_v8  ;;  %v234_v27 = vcombine.high %v549_v9, %v549_v9  ;;  %p683_p12 = scmp.ne.s32.totalorder %s439_s22, %s682_s9  ;;  %p988_p1 = scmp.ne.s32.totalorder %s978_s24, 0 }
  0x4d   : > { %v248_v23 = vadd.f32 %v247_v19, %v246_v12  ;;  %v258_v24 = vadd.f32 %v257_v20, %v256_v14  ;;  %v252_v25 = vsel %vm245_vm0, %v230_v15, 0.0  ;;  %v262_v26 = vsel %vm245_vm0, %v232_v17, 0.0  ;;  %s758_s10 = smov [#allocation7]  }
  0x4e   : > { %v253_v28 = vadd.f32 %v252_v25, %v251_v16  ;;  %v263_v29 = vadd.f32 %v262_v26, %v261_v21  ;;  %v266_v30 = vsel %vm245_vm0, %v548_v8, 0.0  ;;  %v267_v31 = vsel %vm245_vm0, %v233_v22, 0.0  ;;  %p684_p7 = pnand %p683_p12, %p988_p1  ;;  %s686_s17 = sshll.u32 %s758_s10, 4  ;;  %s687_s17 = int_to_ptr.vmem [resolvable:$false] %s686_s17 }
  0x4f   : > { %249 = vadd.xlane.f32.xlu0 %v248_v23  ;;  %259 = vadd.xlane.f32.xlu1 %v258_v24  ;;  %v271_v32 = vsel %vm245_vm0, %v549_v9, 0.0  ;;  %v272_v33 = vsel %vm245_vm0, %v234_v27, 0.0  ;;  %v235_v34 = vcombine.high %v552_v10, %v552_v10  ;;  %v236_v35 = vcombine.high %v553_v18, %v553_v18  ;;  %v530_v27 = vld [vmem:[%s970_s2] ss:$0 sm:$0xff]  ;;  %s688_s16 = scalar_lea.vmem %s687_s17, 256  ;;  %p689_p9 = scmp.lt.s32.totalorder %s439_s22, %s687_s17 }
  0x50   : > { %v268_v36 = vadd.f32 %v267_v31, %v266_v30  ;;  %v273_v37 = vadd.f32 %v272_v33, %v271_v32  ;;  %v276_v38 = vsel %vm245_vm0, %v552_v10, 0.0  ;;  %v281_v40 = vsel %vm245_vm0, %v553_v18, 0.0  ;;  %p685_p8 = pneg %p684_p7  ;;  %p690_p10 = scmp.lt.s32.totalorder %s688_s16, %s682_s9 }
  0x51   : > { %v277_v39 = vsel %vm245_vm0, %v235_v34, 0.0  ;;  %v282_v41 = vsel %vm245_vm0, %v236_v35, 0.0  ;;  %v373_v46 = vsel %vm371_vm1, %v294_v44, 0  ;;  %vm757_vm2 = vmmov 0  }
  0x52   : > { %v278_v42 = vadd.f32 %v277_v39, %v276_v38  ;;  %v283_v43 = vadd.f32 %v282_v41, %v281_v40  ;;  %560 = vmatpush3.bf16.msra.mxu0 %v373_v46  ;;  %561 = vmatprep.mubr.msk.bf16.mxu0 %vm757_vm2, %v756_v45  ;;  %v319_v48 = vand.u32 127, %v318_v47  ;;  %v321_v49 = vshrl.u32 %v318_v47, 7  ;;  %p691_p2 = por %p690_p10, %p689_p9 }
  0x53   : > { %254 = vadd.xlane.f32.xlu0 %v253_v28  ;;  %264 = vadd.xlane.f32.xlu1 %v263_v29  ;;  %vm352_vm3 = vcmask 1041409   ;;  %vm354_vm4 = vcmask 1042434   ;;  %vm356_vm5 = vcmask 1043459   ;;  %vm358_vm6 = vcmask 1044484  }
  0x54   : > { %v322_v54 = vsub.s32 %v319_v48, %v321_v49  ;;  %vm360_vm7 = vcmask 1045509   ;;  %vm362_vm8 = vcmask 1046534   ;;  %vm364_vm9 = vcmask 1047559   ;;  %p692_p0 = pnand %p691_p2, %p685_p8 }
  0x55   : > { %vm367_vm10 = vcmask 31744   ;;  %vm416_vm11 = vcmask 261120  }
  0x57   : > { %269 = vadd.xlane.f32.xlu0 %v268_v36  ;;  %274 = vadd.xlane.f32.xlu1 %v273_v37 }
  0x5b   : > { %279 = vadd.xlane.f32.xlu0 %v278_v42  ;;  %284 = vadd.xlane.f32.xlu1 %v283_v43 }
  0xd8   : > { %v250_v50 = vpop.xlane.xlu0 %249  ;;  %v260_v51 = vpop.xlane.xlu1 %259 }
  0xd9   : > { %v286_v52 = vpack.c.bf16 %v250_v50, %v250_v50  ;;  %v288_v53 = vpack.c.bf16 %v260_v51, %v260_v51 }
  0xdb   : > { %v310_v55 = vunpack.c.l.b16 %v286_v52  ;;  %v312_v60 = vunpack.c.l.b16 %v288_v53 }
  0xdc   : > { %v255_v56 = vpop.xlane.xlu0 %254  ;;  %v265_v57 = vpop.xlane.xlu1 %264 }
  0xdd   : > { %v287_v58 = vpack.c.bf16 %v255_v56, %v255_v56  ;;  %v289_v59 = vpack.c.bf16 %v265_v57, %v265_v57  ;;  %v323_v63 = vrot.slane %v310_v55, %v322_v54  ;;  %v331_v6 = vrot.slane %v312_v60, %v322_v54 }
  0xdf   : > { %v311_v61 = vunpack.c.l.b16 %v287_v58  ;;  %v313_v62 = vunpack.c.l.b16 %v289_v59 }
  0xe0   : > { %v270_v0 = vpop.xlane.xlu0 %269  ;;  %v275_v1 = vpop.xlane.xlu1 %274 }
  0xe1   : > { %v327_v2 = vrot.slane %v311_v61, %v322_v54  ;;  %v335_v3 = vrot.slane %v313_v62, %v322_v54  ;;  %v290_v4 = vpack.c.bf16 %v270_v0, %v270_v0  ;;  %v291_v5 = vpack.c.bf16 %v275_v1, %v275_v1 }
  0xe3   : > { %v353_v7 = vsel %vm352_vm3, %v327_v2, %v323_v63  ;;  %v314_v8 = vunpack.c.l.b16 %v290_v4  ;;  %v315_v9 = vunpack.c.l.b16 %v291_v5 }
  0xe4   : > { %v355_v10 = vsel %vm354_vm4, %v331_v6, %v353_v7  ;;  %v280_v11 = vpop.xlane.xlu0 %279  ;;  %v285_v12 = vpop.xlane.xlu1 %284 }
  0xe5   : > { %v357_v13 = vsel %vm356_vm5, %v335_v3, %v355_v10  ;;  %v339_v14 = vrot.slane %v314_v8, %v322_v54  ;;  %v292_v15 = vpack.c.bf16 %v280_v11, %v280_v11  ;;  %v343_v16 = vrot.slane %v315_v9, %v322_v54 }
  0xe6   : > { %v293_v17 = vpack.c.bf16 %v285_v12, %v285_v12 }
  0xe7   : > { %v359_v18 = vsel %vm358_vm6, %v339_v14, %v357_v13  ;;  %v316_v19 = vunpack.c.l.b16 %v292_v15 }
  0xe8   : > { %v317_v20 = vunpack.c.l.b16 %v293_v17  ;;  %v361_v22 = vsel %vm360_vm7, %v343_v16, %v359_v18 }
  0xe9   : > { %v347_v21 = vrot.slane %v316_v19, %v322_v54 }
  0xea   : > { %v351_v23 = vrot.slane %v317_v20, %v322_v54 }
  0xeb   : > { %v363_v24 = vsel %vm362_vm8, %v347_v21, %v361_v22 }
  0xec   : > { %v365_v25 = vsel %vm364_vm9, %v351_v23, %v363_v24 }
  0xed   : > { %v366_v26 = vpack.c.b16 %v365_v25, %v365_v25 }
  0xef   : > { %562 = vmatmul.mubr.msk.bf16.vlgmr.msra.gmra.mxu0 %vm367_vm10, %v366_v26 }
 0x1af   : > { %v409_v28 = vpop.f32.mrf.mxu0 }
 0x1b0   : > { %v410_v29 = vadd.f32 %v530_v27, %v409_v28 }
 0x1b1   : > { %v563_v30 = vpop.f32.mrf.mxu0 }
 0x1b2   : > { %v415_v31 = vmul.f32 %v410_v29, %v410_v29 }
 0x1b3   : > { %v412_v32 = vpop.f32.mrf.mxu0 }
 0x1b4   : > { %v417_v33 = vsel %vm416_vm11, %v415_v31, 0.0 }
 0x1b5   : > { %418 = vadd.xlane.f32.xlu0 %v417_v33  ;;  %v564_v34 = vpop.f32.mrf.mxu0 }
 0x23e   : > { %v419_v35 = vpop.xlane.xlu0 %418 }
 0x23f   : > { %v420_v36 = vmax.f32 %v419_v35, 1e-24 }
 0x241   : > { %626 = vrsqrt.f32 %v420_v36 }
 0x24e   : > { %v627_v37 = vpop.eup %626 }
 0x24f   : > { %v422_v38 = vmul.f32 %v627_v37, %v410_v29 }
 0x251   : > { %423 = vst.msk [vmem:[%s202_s20] sm:$0xff] %vm416_vm11, %v422_v38 }
 0x252   : > { %695 = shalt.err (!%p692_p0)
}
 0x253   : > { %s696_s19 = scalar_lea.hbm %s436_s30, 128  ;;  %s700_s29 = scalar_lea.hbm %s971_s3, 256 }
 0x254   : > { %p697_p4 = scmp.ne.s32.totalorder %s436_s30, %s696_s19  ;;  %p701_p6 = scmp.lt.s32.totalorder %s436_s30, %s971_s3 }
 0x255   : > { %p702_p13 = scmp.lt.s32.totalorder %s700_s29, %s696_s19 }
 0x256   : > { %p698_p11 = pnand %p697_p4, %p988_p1 }
 0x257   : > { %p703_p3 = por %p702_p13, %p701_p6 }
 0x258   : > { %p699_p5 = pneg %p698_p11 }
 0x25a   : > { %p704_p12 = pnand %p703_p3, %p699_p5 }
 0x25c   : > { %707 = shalt.err (!%p704_p12)
}
 0x25d   : > { %571 = dma.vmem_to_hbm [thread:$0]  (%p988_p1), %s439_s22, 128, %s436_s30, %s425_s8  }
 0x25e PF: > { %s450_s26 = sand.u32 1, %s738_s12   ;;  %p989_p7 = scmp.ne.s32.totalorder %s979_s25, 0 }
 0x25f   : > { %p990_p8 = scmp.ge.s32.totalorder %s750_s15, 2  ;;  %s451_s4 = scalar_lea.sflag [#allocation4], %s450_s26 }
 0x261   : > { %p582_p9 = pnand %p990_p8, %p989_p7 }
 0x263   : > { %p583_p10 = pneg %p582_p9 }
 0x265   : > { %733 = dma.done.wait (%p583_p10), %s451_s4, 128  }
 0x266   : > { %735 = vsyncadd (%p583_p10), %s451_s4, 4294967168  ;;  %p17_p2 = scmp.ge.s32.totalorder %s804_s18, 4   ;;  %s991_s12 = smov %s742_s13 }
 0x267   : > { %s992_s13 = smov %s746_s14  ;;  %s993_s14 = smov %s816_s21 }
 0x268   : > { %s994_s15 = smov %s804_s18  ;;  %19 = sbr.rel (!%p17_p2) target bundleno = 6 (0x6), region = 81 }
 0x26d   :  { %456 = vsyncpa [#allocation3], 1 }
 0x26e   :  { %458 = vsyncpa [#allocation3 + $0x1], 1 }
 0x26f   :  { %459 = vsyncpa [#allocation6], 1 }
 0x270   :  { %460 = vsyncpa [#allocation4], 1 }
 0x271   :  { %462 = vsyncpa [#allocation4 + $0x1], 1 }

</bundles_post_ra>
